<compile_context>
chip_gen: v5e
topology: v5e:2x2
jax: 0.10.0
libtpu: 0.0.40
codegen_flags: <defaults>
</compile_context>

<pallas_src>
import numpy as np

import jax
import jax.numpy as jnp
from jax.experimental import pallas as pl
from jax.experimental.pallas import tpu as pltpu


def _round_up(x: int, m: int) -> int:
    return (x + m - 1) // m * m


def _lmfe_kernel(x_ref, fb_ref, o_ref):
    # x_ref : (TM, half_pad)       producer dtype (f32/bf16) -- row tile of frames
    # fb_ref: (half_pad, num_mels) bf16 -- zero-padded, pre-transposed mel bank
    # o_ref : (TM, num_mels)       f32
    x = x_ref[...].astype(jnp.float32)          # in-vreg upcast (v5e-safe f32 VPU/EUP)
    xp1 = x + 1.0
    mag = xp1 * xp1                             # VPU, f32
    mels = jnp.dot(mag.astype(jnp.bfloat16), fb_ref[...],
                   preferred_element_type=jnp.float32)   # MXU bf16xbf16 -> f32 acc
    o_ref[...] = jnp.log2(mels)                 # EUP


def lmfe_pallas(x, filter_banks, fft_size: int, num_mels: int, *, tm: int = 2048):
    """Pallas implementation of chisel4ml::lmfe.

    x            : (B, num_frames, fft_size) float (f32 or bf16)
    filter_banks : (num_mels, half) float,  half = fft_size // 2 + 1
    returns      : (B, num_frames, num_mels) float32
    """
    B, F, S = x.shape
    half = fft_size // 2 + 1
    assert filter_banks.shape == (num_mels, half), filter_banks.shape

    half_pad = _round_up(half, 128)
    M = B * F
    tm = max(8, min(tm, _round_up(M, 8)))

    # Free reshape (row-major); keep producer dtype -- upcast happens in-kernel.
    x2 = x.reshape(M, S)
    if S < half_pad:
        # TODO(synk): only triggers for small fft sizes where fft_size < half_pad;
        #             this costs one extra HBM pass over x in that rare config.
        x2 = jnp.pad(x2, ((0, 0), (0, half_pad - S)))

    # Pre-transposed filter bank, zero padded along K: rows [half:half_pad) are
    # exactly zero so the padded (x+1)^2 columns contribute nothing.  bf16 for
    # cheap MXU cadence (f32 accumulation keeps the error ~0.4%).
    fb_t = jnp.zeros((half_pad, num_mels), jnp.float32)
    fb_t = fb_t.at[:half, :].set(filter_banks.astype(jnp.float32).T)
    fb_t = fb_t.astype(jnp.bfloat16)

    grid = (pl.cdiv(M, tm),)

    x_itemsize = jnp.dtype(x.dtype).itemsize
    flops = 2 * M * half_pad * num_mels + 2 * M * half_pad
    bytes_accessed = (x_itemsize * M * half_pad
                      + 2 * half_pad * num_mels
                      + 4 * M * num_mels)

    out = pl.pallas_call(
        _lmfe_kernel,
        out_shape=jax.ShapeDtypeStruct((M, num_mels), jnp.float32),
        grid_spec=pltpu.PrefetchScalarGridSpec(
            num_scalar_prefetch=0,
            grid=grid,
            in_specs=[
                # Row tile of x; the [:half_pad] column slice happens here.
                pl.BlockSpec((tm, half_pad), lambda i: (i, 0)),
                # Filter bank: constant block index -> DMA'd once, VMEM-resident.
                pl.BlockSpec((half_pad, num_mels), lambda i: (0, 0)),
            ],
            # Full-extent last dim (num_mels < 128 is legal because it equals
            # the array dim) -> no post-kernel slice copy is needed.
            out_specs=pl.BlockSpec((tm, num_mels), lambda i: (i, 0)),
        ),
        compiler_params=pltpu.CompilerParams(
            dimension_semantics=("parallel",),
        ),
        cost_estimate=pl.CostEstimate(
            flops=flops,
            transcendentals=M * num_mels,
            bytes_accessed=bytes_accessed,
        ),
    )(x2, fb_t)

    return out.reshape(B, F, num_mels)


def _reference(x, filter_banks, fft_size):
    half = fft_size // 2 + 1
    fft_res = x[:, :, :half].astype(jnp.float32)
    mag = (fft_res + 1.0) ** 2
    return jnp.log2(mag @ filter_banks.astype(jnp.float32).T)


if __name__ == "__main__":
    # Small, deterministic example consistent with the module's forward.
    fft_size = 512
    num_mels = 20
    num_frames = 8
    batch = 2
    half = fft_size // 2 + 1

    key = jax.random.PRNGKey(0)
    kx, kf = jax.random.split(key)
    x = jax.random.normal(kx, (batch, num_frames, fft_size), jnp.float32)
    # Mel filter banks are non-negative; use uniform(0.01, 1) so mels > 0.
    filter_banks = jax.random.uniform(
        kf, (num_mels, half), jnp.float32, minval=0.01, maxval=1.0)

    out = lmfe_pallas(x, filter_banks, fft_size, num_mels)
    out = jax.block_until_ready(out)
    ref = _reference(x, filter_banks, fft_size)
    np.testing.assert_allclose(np.asarray(out), np.asarray(ref),
                               rtol=2e-2, atol=2e-2)

    # Tiny-M edge case: B*F = 3 (< 8) exercises the masked edge block.
    x_small = jax.random.normal(key, (1, 3, fft_size), jnp.float32)
    out_small = jax.block_until_ready(
        lmfe_pallas(x_small, filter_banks, fft_size, num_mels))
    ref_small = _reference(x_small, filter_banks, fft_size)
    np.testing.assert_allclose(np.asarray(out_small), np.asarray(ref_small),
                               rtol=2e-2, atol=2e-2)

    print("KERNEL_OK")
</pallas_src>

<mosaic_0001>
module attributes {stable_mosaic.version = 11 : i64} {
  func.func @_lmfe_kernel(%arg0: i32, %arg1: memref<16x384xf32, #tpu.memory_space<vmem>>, %arg2: memref<384x20xbf16, #tpu.memory_space<vmem>>, %arg3: memref<16x20xf32, #tpu.memory_space<vmem>>) attributes {dimension_semantics = [#tpu.dimension_semantics<parallel>], iteration_bounds = array<i64: 1>, scalar_prefetch = 0 : i64, scratch_operands = 0 : i64, tpu.core_type = #tpu.core_type<tc>, window_params = [{transform_indices = @transform_0, window_bounds = array<i64: 16, 384>}, {pipeline_mode = #tpu.pipeline_mode<synchronous>, transform_indices = @transform_1, window_bounds = array<i64: 384, 20>}, {transform_indices = @transform_2, window_bounds = array<i64: 16, 20>}]} {
    %c0 = arith.constant 0 : index
    %c0_0 = arith.constant 0 : index
    %0 = vector.load %arg1[%c0, %c0_0] : memref<16x384xf32, #tpu.memory_space<vmem>>, vector<16x384xf32>
    %cst = arith.constant 1.000000e+00 : f32
    %1 = vector.broadcast %cst : f32 to vector<16x384xf32>
    %2 = arith.addf %0, %1 : vector<16x384xf32>
    %3 = arith.mulf %2, %2 : vector<16x384xf32>
    %4 = arith.truncf %3 : vector<16x384xf32> to vector<16x384xbf16>
    %c0_1 = arith.constant 0 : index
    %c0_2 = arith.constant 0 : index
    %5 = vector.load %arg2[%c0_1, %c0_2] : memref<384x20xbf16, #tpu.memory_space<vmem>>, vector<384x20xbf16>
    %cst_3 = arith.constant dense<0.000000e+00> : vector<16x20xf32>
    %6 = tpu.matmul %4, %5, %cst_3 {dimension_numbers = #tpu.dot_dimension_numbers<[1], [0], [0], [1], [0, 0, 1, 1], [], []>} : vector<16x384xbf16>, vector<384x20xbf16>, vector<16x20xf32> -> vector<16x20xf32>
    %7 = math.log %6 : vector<16x20xf32>
    %cst_4 = arith.constant 2.000000e+00 : f32
    %8 = math.log %cst_4 : f32
    %9 = vector.broadcast %8 : f32 to vector<16x20xf32>
    %10 = arith.divf %7, %9 : vector<16x20xf32>
    %c0_5 = arith.constant 0 : index
    %c0_6 = arith.constant 0 : index
    %11 = vector.load %arg3[%c0_5, %c0_6] : memref<16x20xf32, #tpu.memory_space<vmem>>, vector<16x20xf32>
    tpu.vector_store %arg3[%c0_5, %c0_6], %10 {strides = array<i32>} : memref<16x20xf32, #tpu.memory_space<vmem>>, vector<16x20xf32>,
    return
  }
  func.func @transform_0(%arg0: i32) -> (i32, i32) {
    %c0_i32 = arith.constant 0 : i32
    %c0_i32_0 = arith.constant 0 : i32
    return %arg0, %c0_i32 : i32, i32
  }
  func.func @transform_1(%arg0: i32) -> (i32, i32) {
    %c0_i32 = arith.constant 0 : i32
    %c0_i32_0 = arith.constant 0 : i32
    %c0_i32_1 = arith.constant 0 : i32
    return %c0_i32, %c0_i32_0 : i32, i32
  }
  func.func @transform_2(%arg0: i32) -> (i32, i32) {
    %c0_i32 = arith.constant 0 : i32
    %c0_i32_0 = arith.constant 0 : i32
    return %arg0, %c0_i32 : i32, i32
  }
}

</mosaic_0001>

<bundles_post_ra>
// kernel: tpu_custom_call.1
= control target key start
LH: loop header
LB: loop body
LE: loop exit
PB: predicated region body
PF: predicated region fallthrough
CT: control target
= control target key end

     0   :  { %s602_s0 = inlined_call_operand.vmem [shape: f32[16,512], index: 0, kind: input, shape index: {}]   ;;  %s603_s1 = inlined_call_operand.vmem [shape: bf16[384,20], index: 1, kind: input, shape index: {}]   ;;  %s604_s2 = inlined_call_operand.hbm [shape: f32[16,20], index: 2, kind: output, shape index: {}]  }
   0x1   :  { %v437_v0 = vld [vmem:[%s603_s1 + $0x38] sm:$0xff]  ;;  %v436_v3 = vld [vmem:[%s603_s1 + $0x30] sm:$0xff]  ;;  %v435_v6 = vld [vmem:[%s603_s1 + $0x28] sm:$0xff] }
   0x2   :  { %v445_v1 = vld [vmem:[%s603_s1 + $0x78] sm:$0xff]  ;;  %254 = vmatpush.bf16.msra.mxu0 %v437_v0  ;;  %v444_v4 = vld [vmem:[%s603_s1 + $0x70] sm:$0xff]  ;;  %v443_v7 = vld [vmem:[%s603_s1 + $0x68] sm:$0xff] }
   0x3   :  { %v453_v2 = vld [vmem:[%s603_s1 + $0xb8] sm:$0xff]  ;;  %268 = vmatpush.bf16.msra.mxu1 %v445_v1  ;;  %v452_v5 = vld [vmem:[%s603_s1 + $0xb0] sm:$0xff]  ;;  %v451_v8 = vld [vmem:[%s603_s1 + $0xa8] sm:$0xff] }
   0x4   :  { %282 = vmatpush.bf16.msra.mxu2 %v453_v2  ;;  %v434_v9 = vld [vmem:[%s603_s1 + $0x20] sm:$0xff] }
   0x5   :  { %v442_v10 = vld [vmem:[%s603_s1 + $0x60] sm:$0xff] }
   0x6   :  { %255 = vmatpush.bf16.msra.mxu0 %v436_v3 }
   0x7   :  { %269 = vmatpush.bf16.msra.mxu1 %v444_v4 }
   0x8   :  { %283 = vmatpush.bf16.msra.mxu2 %v452_v5 }
   0xa   :  { %256 = vmatpush.bf16.msra.mxu0 %v435_v6 }
   0xb   :  { %270 = vmatpush.bf16.msra.mxu1 %v443_v7 }
   0xc   :  { %7 = vsyncpa [#allocation4], 0  ;;  %284 = vmatpush.bf16.msra.mxu2 %v451_v8  ;;  %v450_v11 = vld [vmem:[%s603_s1 + $0xa0] sm:$0xff]  ;;  %v433_v12 = vld [vmem:[%s603_s1 + $0x18] sm:$0xff]  ;;  %v490_v45 = vmov 0.6931472  }
   0xd   :  { %v441_v13 = vld [vmem:[%s603_s1 + $0x58] sm:$0xff]  ;;  %v432_v15 = vld [vmem:[%s603_s1 + $0x10] sm:$0xff]  ;;  %v22_v17 = vld [vmem:[%s602_s0] sm:$0xff]  ;;  %458 = vrcp.f32 %v490_v45  ;;  %vm309_vm1 = vcmask 162816   ;;  %s318_s15 = sshll.u32 %s604_s2, 4  ;;  %s492_s16 = smov 128   ;;  %s319_s15 = int_to_ptr.hbm [resolvable:$true] %s318_s15 }
   0xe   :  { %257 = vmatpush.bf16.msra.mxu0 %v434_v9  ;;  %v449_v14 = vld [vmem:[%s603_s1 + $0x98] sm:$0xff]  ;;  %v440_v16 = vld [vmem:[%s603_s1 + $0x50] sm:$0xff]  ;;  %v28_v18 = vld [vmem:[%s602_s0 + $0x20] sm:$0xff]  ;;  %v47_v24 = vadd.f32 1.0, %v22_v17  ;;  %s493_s17 = smov 8  }
   0xf   :  { %271 = vmatpush.bf16.msra.mxu1 %v442_v10  ;;  %v24_v19 = vld [vmem:[%s602_s0 + $0x8] sm:$0xff]  ;;  %v448_v21 = vld [vmem:[%s603_s1 + $0x90] sm:$0xff]  ;;  %v50_v25 = vadd.f32 1.0, %v28_v18  ;;  %v430_v37 = vld [vmem:[%s603_s1] sm:$0xff] }
  0x10   :  { %285 = vmatpush.bf16.msra.mxu2 %v450_v11  ;;  %v30_v20 = vld [vmem:[%s602_s0 + $0x28] sm:$0xff]  ;;  %v26_v22 = vld [vmem:[%s602_s0 + $0x10] sm:$0xff]  ;;  %v48_v26 = vadd.f32 1.0, %v24_v19  ;;  %v53_v33 = vmul.f32 %v47_v24, %v47_v24  ;;  %v438_v38 = vld [vmem:[%s603_s1 + $0x40] sm:$0xff] }
  0x11   :  { %v32_v23 = vld [vmem:[%s602_s0 + $0x30] sm:$0xff]  ;;  %v51_v27 = vadd.f32 1.0, %v30_v20  ;;  %v431_v28 = vld [vmem:[%s603_s1 + $0x8] sm:$0xff]  ;;  %v49_v30 = vadd.f32 1.0, %v26_v22  ;;  %v56_v34 = vmul.f32 %v50_v25, %v50_v25  ;;  %v446_v41 = vld [vmem:[%s603_s1 + $0x80] sm:$0xff] }
  0x12   :  { %258 = vmatpush.bf16.msra.mxu0 %v433_v12  ;;  %v439_v29 = vld [vmem:[%s603_s1 + $0x48] sm:$0xff]  ;;  %v52_v31 = vadd.f32 1.0, %v32_v23  ;;  %v54_v35 = vmul.f32 %v48_v26, %v48_v26 }
  0x13   :  { %272 = vmatpush.bf16.msra.mxu1 %v441_v13  ;;  %v447_v32 = vld [vmem:[%s603_s1 + $0x88] sm:$0xff]  ;;  %v57_v36 = vmul.f32 %v51_v27, %v51_v27  ;;  %v55_v39 = vmul.f32 %v49_v30, %v49_v30  ;;  %v59_v42 = vpack.c.bf16 %v56_v34, %v53_v33  ;;  %v459_v46 = vpop.eup %458  ;;  %s491_s1 = smov [#allocation3]  }
  0x14   :  { %286 = vmatpush.bf16.msra.mxu2 %v449_v14  ;;  %v58_v40 = vmul.f32 %v52_v31, %v52_v31  ;;  %v301_v47 = vmul.f32 0.6931472, %v459_v46  ;;  %vm305_vm0 = vweird.f32 %v459_v46  ;;  %s316_s12 = sshll.u32 %s491_s1, 4  ;;  %s317_s12 = int_to_ptr.vmem [resolvable:$true] %s316_s12 }
  0x15   :  { %v60_v43 = vpack.c.bf16 %v57_v36, %v54_v35 }
  0x16   :  { %259 = vmatpush.bf16.msra.mxu0 %v432_v15  ;;  %v61_v44 = vpack.c.bf16 %v58_v40, %v55_v39  ;;  %v302_v51 = vsub.f32 1.0, %v301_v47 }
  0x17   :  { %273 = vmatpush.bf16.msra.mxu1 %v440_v16 }
  0x18   :  { %287 = vmatpush.bf16.msra.mxu2 %v448_v21  ;;  %v303_v54 = vmul.f32 %v459_v46, %v302_v51 }
  0x1a   :  { %260 = vmatpush.bf16.msra.mxu0 %v431_v28  ;;  %v304_v57 = vadd.f32 %v459_v46, %v303_v54 }
  0x1b   :  { %274 = vmatpush.bf16.msra.mxu1 %v439_v29 }
  0x1c   :  { %288 = vmatpush.bf16.msra.mxu2 %v447_v32  ;;  %v306_v61 = vsel %vm305_vm0, %v459_v46, %v304_v57 }
  0x1e   :  { %261 = vmatpush.bf16.msra.mxu0 %v430_v37 }
  0x1f   :  { %275 = vmatpush.bf16.msra.mxu1 %v438_v38 }
  0x20   :  { %289 = vmatpush.bf16.msra.mxu2 %v446_v41 }
  0x21   :  { %262 = vmatmul.bf16.vlgmr.msra.gmra.mxu0 %v59_v42 }
  0x22   :  { %276 = vmatmul.bf16.vlgmr.msra.gmra.mxu1 %v60_v43 }
  0x23   :  { %290 = vmatmul.bf16.vlgmr.msra.gmra.mxu2 %v61_v44 }
  0x9e   :  { %v263_v48 = vpop.f32.mrf.mxu0 }
  0x9f   :  { %v277_v49 = vpop.f32.mrf.mxu1 }
  0xa0   :  { %v278_v50 = vadd.f32 %v277_v49, %v263_v48 }
  0xa6   :  { %v291_v52 = vpop.f32.mrf.mxu2  ;;  %v265_v55 = vpop.f32.mrf.mxu0 }
  0xa7   :  { %v292_v53 = vadd.f32 %v291_v52, %v278_v50  ;;  %v279_v56 = vpop.f32.mrf.mxu1 }
  0xa8   :  { %v280_v58 = vadd.f32 %v279_v56, %v265_v55 }
  0xa9   :  { %460 = vlog2.f32 %v292_v53 }
  0xae   :  { %v293_v59 = vpop.f32.mrf.mxu2 }
  0xaf   :  { %v461_v60 = vpop.eup %460  ;;  %v294_v62 = vadd.f32 %v293_v59, %v280_v58 }
  0xb0   :  { %v297_v63 = vmul.f32 0.6931472, %v461_v60 }
  0xb1   :  { %462 = vlog2.f32 %v294_v62 }
  0xb2   :  { %v307_v0 = vmul.f32 %v306_v61, %v297_v63 }
  0xb4   :  { %310 = vst.msk [vmem:[#allocation3] sm:$0xff] %vm309_vm1, %v307_v0 }
  0xb7   :  { %v463_v1 = vpop.eup %462 }
  0xb8   :  { %v299_v2 = vmul.f32 0.6931472, %v463_v1 }
  0xba   :  { %v308_v3 = vmul.f32 %v306_v61, %v299_v2 }
  0xbc   :  { %311 = vst.msk [vmem:[#allocation3 + $0x8] sm:$0xff] %vm309_vm1, %v308_v3 }
  0xbd   :  { %324 = dma.vmem_to_hbm [thread:$0]  %s317_s12, 256, %s319_s15, [#allocation4], %s492_s16, %s492_s16, %s493_s17  }
  0xbe   :  { %488 = dma.done.wait [#allocation4], 256  }
  0xbf   :  { %489 = vsyncadd [#allocation4], 4294967040 }
  0xc0   :  { %329 = vsyncpa [#allocation4], 1 }

</bundles_post_ra>
